<compile_context>
chip_gen: v6e
topology: v6e:2x2x1
jax: 0.10.0
libtpu: 0.0.40
codegen_flags: <defaults>
</compile_context>

<pallas_src>
import functools

import jax
import jax.numpy as jnp
from jax.experimental import pallas as pl
from jax.experimental.pallas import tpu as pltpu


def _cdiv(a, b):
    return -(-a // b)


def _autoencoder_kernel(x_ref,
                        w1_ref, b1_ref,
                        w23_ref, b23_ref,
                        w4_ref, b4_ref,
                        o_ref):
    """Fused forward (3 matmuls + biases + 2 ReLUs) for one packed batch tile."""
    x = x_ref[...]                                   # (tr, 128) compute dtype

    # encoder first layer (block-diagonal-packed weights)
    h1 = jnp.dot(x, w1_ref[...], preferred_element_type=jnp.float32) + b1_ref[...]
    h1 = jnp.maximum(h1, 0.0)                        # ReLU in f32 (VPU)
    h1 = h1.astype(w1_ref.dtype)                     # back to compute dtype for MXU

    # fused (encoder 2nd layer) @ (decoder 1st layer) -- no ReLU between them
    h2 = jnp.dot(h1, w23_ref[...], preferred_element_type=jnp.float32) + b23_ref[...]
    h2 = jnp.maximum(h2, 0.0)
    h2 = h2.astype(w23_ref.dtype)

    # decoder output layer -> lane-dense 128-wide store
    dec = jnp.dot(h2, w4_ref[...], preferred_element_type=jnp.float32) + b4_ref[...]
    o_ref[...] = dec.astype(o_ref.dtype)


def _choose_tile(R, tr_req, sub):
    """Packed-row tile: large, sublane-aligned, >= 2 grid steps when batch is big."""
    if R <= sub:
        return R                       # single block == full array (exempt from (8,128))
    num_tiles = _cdiv(R, tr_req)
    # keep both v7x TensorCores busy for mid-size batches (2048 packed rows
    # ~= 4096 original rows at pack=2)
    if num_tiles == 1 and R >= 2048:
        num_tiles = 2
    tr = _cdiv(_cdiv(R, num_tiles), sub) * sub
    return min(tr, R)


def autoencoder_forward(x, params, *, batch_tile=8192, compute_dtype=jnp.bfloat16):
    """x: (B, D) float32.  params: dict of transposed (in, out) weights/biases."""
    B, D = x.shape
    w1, b1 = params["w1"], params["b1"]   # (D, 2E), (1, 2E)
    w2, b2 = params["w2"], params["b2"]   # (2E, E), (1, E)
    w3, b3 = params["w3"], params["b3"]   # (E, 2E), (1, 2E)
    w4, b4 = params["w4"], params["b4"]   # (2E, D), (1, D)
    H = w1.shape[1]                       # hidden width = 2E

    # ---- exact fusion of the two un-activated middle linears (in f32) ----
    w23 = w2 @ w3                         # (2E, 2E)
    b23 = b2 @ w3 + b3                    # (1, 2E)

    # ---- lane-dense packing: `pack` batch rows per 128-lane row ----
    pack = (128 // D) if (0 < D < 128 and 128 % D == 0) else 1
    cd = jnp.dtype(compute_dtype)

    eye = jnp.eye(pack, dtype=jnp.float32)

    def pk_w(w):   # [xa | xb] @ kron(I, W) == [xa @ W | xb @ W]
        return (jnp.kron(eye, w) if pack > 1 else w).astype(cd)

    def pk_b(b):   # bias tiled along lanes, kept in f32 for the VPU add
        return (jnp.tile(b, (1, pack)) if pack > 1 else b).astype(jnp.float32)

    w1_c, w23_c, w4_c = pk_w(w1), pk_w(w23), pk_w(w4)
    b1_c, b23_c, b4_c = pk_b(b1), pk_b(b23), pk_b(b4)

    # ---- activations to compute dtype; pad only to a multiple of `pack` ----
    x_c = x.astype(cd)
    B_pack = _cdiv(B, pack) * pack
    if B_pack != B:                       # at most pack-1 extra rows (rare, tiny)
        x_c = jnp.pad(x_c, ((0, B_pack - B), (0, 0)))
    R, Wl = B_pack // pack, pack * D
    x_p = x_c.reshape(R, Wl)              # contiguous -> free view, 128 lanes wide

    # ---- tile selection (packed rows) ----
    sub = {4: 8, 2: 16, 1: 32}.get(cd.itemsize, 8)   # sublane multiple per dtype
    tr = _choose_tile(R, max(batch_tile // pack, sub), sub)
    grid_b = _cdiv(R, tr)                 # last block may be partial (Pallas masks it)

    def resident(arr):                    # constant index map -> stays in VMEM
        return pl.BlockSpec(arr.shape, lambda i: (0, 0))

    # ---- advisory cost estimate for the XLA scheduler ----
    pH = pack * H
    flops = 2 * R * (Wl * pH + pH * pH + pH * Wl)
    bytes_accessed = (
        R * Wl * (cd.itemsize + jnp.dtype(x.dtype).itemsize)
        + (w1_c.size + w23_c.size + w4_c.size) * cd.itemsize
        + (b1_c.size + b23_c.size + b4_c.size) * 4)
    cost = pl.CostEstimate(flops=flops, transcendentals=0,
                           bytes_accessed=bytes_accessed)

    out = pl.pallas_call(
        _autoencoder_kernel,
        out_shape=jax.ShapeDtypeStruct((R, Wl), x.dtype),
        grid_spec=pltpu.PrefetchScalarGridSpec(
            num_scalar_prefetch=0,
            grid=(grid_b,),
            in_specs=[
                pl.BlockSpec((tr, Wl), lambda i: (i, 0)),   # packed x tile
                resident(w1_c), resident(b1_c),
                resident(w23_c), resident(b23_c),
                resident(w4_c), resident(b4_c),
            ],
            out_specs=pl.BlockSpec((tr, Wl), lambda i: (i, 0)),
        ),
        compiler_params=pltpu.CompilerParams(
            dimension_semantics=("parallel",),
            vmem_limit_bytes=48 * 1024 * 1024),
        cost_estimate=cost,
    )(x_p, w1_c, b1_c, w23_c, b23_c, w4_c, b4_c)

    out = out.reshape(B_pack, D)          # free reshape back to (rows, features)
    if B_pack != B:
        out = out[:B]
    return out


def init_params(key, input_dim, encoding_dim):
    """Deterministic init mirroring nn.Linear shapes (weights stored (in, out))."""
    hid = encoding_dim * 2
    dims = [
        ("w1", "b1", input_dim, hid),
        ("w2", "b2", hid, encoding_dim),
        ("w3", "b3", encoding_dim, hid),
        ("w4", "b4", hid, input_dim),
    ]
    params = {}
    for (wname, bname, fan_in, fan_out) in dims:
        key, kw, kb = jax.random.split(key, 3)
        bound = 1.0 / jnp.sqrt(jnp.float32(fan_in))
        # PyTorch stores weight as (out, in); we store the transpose (in, out).
        params[wname] = jax.random.uniform(
            kw, (fan_in, fan_out), jnp.float32, -bound, bound)
        params[bname] = jax.random.uniform(
            kb, (1, fan_out), jnp.float32, -bound, bound)
    return params


def reference_forward(x, p):
    """Pure-JAX f32 reference matching the PyTorch module exactly."""
    h1 = jnp.maximum(x @ p["w1"] + p["b1"], 0.0)
    enc = h1 @ p["w2"] + p["b2"]
    h2 = jnp.maximum(enc @ p["w3"] + p["b3"], 0.0)
    return h2 @ p["w4"] + p["b4"]


def reference_kernel_numerics(x, p, compute_dtype=jnp.bfloat16):
    """Pure-JAX replica of the kernel's bf16/f32 mixed-precision math."""
    cd = jnp.dtype(compute_dtype)
    w23 = p["w2"] @ p["w3"]
    b23 = p["b2"] @ p["w3"] + p["b3"]
    xc = x.astype(cd)
    h1 = jnp.dot(xc, p["w1"].astype(cd), preferred_element_type=jnp.float32) + p["b1"]
    h1 = jnp.maximum(h1, 0.0).astype(cd)
    h2 = jnp.dot(h1, w23.astype(cd), preferred_element_type=jnp.float32) + b23
    h2 = jnp.maximum(h2, 0.0).astype(cd)
    dec = jnp.dot(h2, p["w4"].astype(cd), preferred_element_type=jnp.float32) + p["b4"]
    return dec.astype(x.dtype)


if __name__ == "__main__":
    key = jax.random.PRNGKey(0)
    input_dim, encoding_dim = 64, 16
    kx, kp, kx2 = jax.random.split(key, 3)
    params = init_params(kp, input_dim, encoding_dim)

    run = jax.jit(functools.partial(autoencoder_forward, batch_tile=8192))

    # ---- small-shape check vs the exact f32 PyTorch-equivalent reference ----
    x = jax.random.normal(kx, (8, input_dim), jnp.float32)
    out = jax.block_until_ready(run(x, params))
    ref = reference_forward(x, params)
    assert out.shape == x.shape and out.dtype == x.dtype
    # bf16 inputs/weights (f32 accumulation) -> loosened tolerance vs f32 ref.
    assert jnp.allclose(out, ref, atol=3e-2, rtol=3e-2), (
        float(jnp.max(jnp.abs(out - ref))))

    # ---- larger batch: exercises the multi-tile grid + a partial last block ----
    x2 = jax.random.normal(kx2, (5000, input_dim), jnp.float32)
    out2 = jax.block_until_ready(run(x2, params))
    ref2 = reference_kernel_numerics(x2, params)
    assert out2.shape == x2.shape
    assert jnp.allclose(out2, ref2, atol=2e-3, rtol=2e-3), (
        float(jnp.max(jnp.abs(out2 - ref2))))

    print("KERNEL_OK")
</pallas_src>

<mosaic_0001>
module attributes {stable_mosaic.version = 11 : i64} {
  func.func @_autoencoder_kernel(%arg0: i32, %arg1: memref<4x128xbf16, #tpu.memory_space<vmem>>, %arg2: memref<128x64xbf16, #tpu.memory_space<vmem>>, %arg3: memref<1x64xf32, #tpu.memory_space<vmem>>, %arg4: memref<64x64xbf16, #tpu.memory_space<vmem>>, %arg5: memref<1x64xf32, #tpu.memory_space<vmem>>, %arg6: memref<64x128xbf16, #tpu.memory_space<vmem>>, %arg7: memref<1x128xf32, #tpu.memory_space<vmem>>, %arg8: memref<4x128xf32, #tpu.memory_space<vmem>>) attributes {dimension_semantics = [#tpu.dimension_semantics<parallel>], iteration_bounds = array<i64: 1>, scalar_prefetch = 0 : i64, scratch_operands = 0 : i64, tpu.core_type = #tpu.core_type<tc>, window_params = [{transform_indices = @transform_0, window_bounds = array<i64: 4, 128>}, {pipeline_mode = #tpu.pipeline_mode<synchronous>, transform_indices = @transform_1, window_bounds = array<i64: 128, 64>}, {pipeline_mode = #tpu.pipeline_mode<synchronous>, transform_indices = @transform_2, window_bounds = array<i64: 1, 64>}, {pipeline_mode = #tpu.pipeline_mode<synchronous>, transform_indices = @transform_3, window_bounds = array<i64: 64, 64>}, {pipeline_mode = #tpu.pipeline_mode<synchronous>, transform_indices = @transform_4, window_bounds = array<i64: 1, 64>}, {pipeline_mode = #tpu.pipeline_mode<synchronous>, transform_indices = @transform_5, window_bounds = array<i64: 64, 128>}, {pipeline_mode = #tpu.pipeline_mode<synchronous>, transform_indices = @transform_6, window_bounds = array<i64: 1, 128>}, {transform_indices = @transform_7, window_bounds = array<i64: 4, 128>}]} {
    %c0 = arith.constant 0 : index
    %c0_0 = arith.constant 0 : index
    %0 = vector.load %arg1[%c0, %c0_0] : memref<4x128xbf16, #tpu.memory_space<vmem>>, vector<4x128xbf16>
    %c0_1 = arith.constant 0 : index
    %c0_2 = arith.constant 0 : index
    %1 = vector.load %arg2[%c0_1, %c0_2] : memref<128x64xbf16, #tpu.memory_space<vmem>>, vector<128x64xbf16>
    %cst = arith.constant dense<0.000000e+00> : vector<4x64xf32>
    %2 = tpu.matmul %0, %1, %cst {dimension_numbers = #tpu.dot_dimension_numbers<[1], [0], [0], [1], [0, 0, 1, 1], [], []>} : vector<4x128xbf16>, vector<128x64xbf16>, vector<4x64xf32> -> vector<4x64xf32>
    %c0_3 = arith.constant 0 : index
    %c0_4 = arith.constant 0 : index
    %3 = vector.load %arg3[%c0_3, %c0_4] : memref<1x64xf32, #tpu.memory_space<vmem>>, vector<1x64xf32>
    %4 = vector.broadcast %3 : vector<1x64xf32> to vector<4x64xf32>
    %5 = arith.addf %2, %4 : vector<4x64xf32>
    %cst_5 = arith.constant 0.000000e+00 : f32
    %6 = vector.broadcast %cst_5 : f32 to vector<4x64xf32>
    %7 = arith.maximumf %5, %6 : vector<4x64xf32>
    %8 = arith.truncf %7 : vector<4x64xf32> to vector<4x64xbf16>
    %c0_6 = arith.constant 0 : index
    %c0_7 = arith.constant 0 : index
    %9 = vector.load %arg4[%c0_6, %c0_7] : memref<64x64xbf16, #tpu.memory_space<vmem>>, vector<64x64xbf16>
    %cst_8 = arith.constant dense<0.000000e+00> : vector<4x64xf32>
    %10 = tpu.matmul %8, %9, %cst_8 {dimension_numbers = #tpu.dot_dimension_numbers<[1], [0], [0], [1], [0, 0, 1, 1], [], []>} : vector<4x64xbf16>, vector<64x64xbf16>, vector<4x64xf32> -> vector<4x64xf32>
    %c0_9 = arith.constant 0 : index
    %c0_10 = arith.constant 0 : index
    %11 = vector.load %arg5[%c0_9, %c0_10] : memref<1x64xf32, #tpu.memory_space<vmem>>, vector<1x64xf32>
    %12 = vector.broadcast %11 : vector<1x64xf32> to vector<4x64xf32>
    %13 = arith.addf %10, %12 : vector<4x64xf32>
    %cst_11 = arith.constant 0.000000e+00 : f32
    %14 = vector.broadcast %cst_11 : f32 to vector<4x64xf32>
    %15 = arith.maximumf %13, %14 : vector<4x64xf32>
    %16 = arith.truncf %15 : vector<4x64xf32> to vector<4x64xbf16>
    %c0_12 = arith.constant 0 : index
    %c0_13 = arith.constant 0 : index
    %17 = vector.load %arg6[%c0_12, %c0_13] : memref<64x128xbf16, #tpu.memory_space<vmem>>, vector<64x128xbf16>
    %cst_14 = arith.constant dense<0.000000e+00> : vector<4x128xf32>
    %18 = tpu.matmul %16, %17, %cst_14 {dimension_numbers = #tpu.dot_dimension_numbers<[1], [0], [0], [1], [0, 0, 1, 1], [], []>} : vector<4x64xbf16>, vector<64x128xbf16>, vector<4x128xf32> -> vector<4x128xf32>
    %c0_15 = arith.constant 0 : index
    %c0_16 = arith.constant 0 : index
    %19 = vector.load %arg7[%c0_15, %c0_16] : memref<1x128xf32, #tpu.memory_space<vmem>>, vector<1x128xf32>
    %20 = vector.broadcast %19 : vector<1x128xf32> to vector<4x128xf32>
    %21 = arith.addf %18, %20 : vector<4x128xf32>
    %c0_17 = arith.constant 0 : index
    %c0_18 = arith.constant 0 : index
    %22 = vector.load %arg8[%c0_17, %c0_18] : memref<4x128xf32, #tpu.memory_space<vmem>>, vector<4x128xf32>
    tpu.vector_store %arg8[%c0_17, %c0_18], %21 {strides = array<i32>} : memref<4x128xf32, #tpu.memory_space<vmem>>, vector<4x128xf32>,
    return
  }
  func.func @transform_0(%arg0: i32) -> (i32, i32) {
    %c0_i32 = arith.constant 0 : i32
    %c0_i32_0 = arith.constant 0 : i32
    return %arg0, %c0_i32 : i32, i32
  }
  func.func @transform_1(%arg0: i32) -> (i32, i32) {
    %c0_i32 = arith.constant 0 : i32
    %c0_i32_0 = arith.constant 0 : i32
    %c0_i32_1 = arith.constant 0 : i32
    return %c0_i32, %c0_i32_0 : i32, i32
  }
  func.func @transform_2(%arg0: i32) -> (i32, i32) {
    %c0_i32 = arith.constant 0 : i32
    %c0_i32_0 = arith.constant 0 : i32
    %c0_i32_1 = arith.constant 0 : i32
    return %c0_i32, %c0_i32_0 : i32, i32
  }
  func.func @transform_3(%arg0: i32) -> (i32, i32) {
    %c0_i32 = arith.constant 0 : i32
    %c0_i32_0 = arith.constant 0 : i32
    %c0_i32_1 = arith.constant 0 : i32
    return %c0_i32, %c0_i32_0 : i32, i32
  }
  func.func @transform_4(%arg0: i32) -> (i32, i32) {
    %c0_i32 = arith.constant 0 : i32
    %c0_i32_0 = arith.constant 0 : i32
    %c0_i32_1 = arith.constant 0 : i32
    return %c0_i32, %c0_i32_0 : i32, i32
  }
  func.func @transform_5(%arg0: i32) -> (i32, i32) {
    %c0_i32 = arith.constant 0 : i32
    %c0_i32_0 = arith.constant 0 : i32
    %c0_i32_1 = arith.constant 0 : i32
    return %c0_i32, %c0_i32_0 : i32, i32
  }
  func.func @transform_6(%arg0: i32) -> (i32, i32) {
    %c0_i32 = arith.constant 0 : i32
    %c0_i32_0 = arith.constant 0 : i32
    %c0_i32_1 = arith.constant 0 : i32
    return %c0_i32, %c0_i32_0 : i32, i32
  }
  func.func @transform_7(%arg0: i32) -> (i32, i32) {
    %c0_i32 = arith.constant 0 : i32
    %c0_i32_0 = arith.constant 0 : i32
    return %arg0, %c0_i32 : i32, i32
  }
}

</mosaic_0001>

<bundles_post_ra>
// kernel: autoencoder_forward.1
= control target key start
LH: loop header
LB: loop body
LE: loop exit
PB: predicated region body
PF: predicated region fallthrough
CT: control target
= control target key end

     0   :  { %v415_v0 = vmov 0.0   ;;  %vm416_vm0 = vmmov 0   ;;  %vm180_vm1 = vcmask 523264   ;;  %s544_s1 = inlined_call_operand.vmem [shape: bf16[128,64], index: 1, kind: input, shape index: {}]   ;;  %s545_s3 = inlined_call_operand.vmem [shape: bf16[64,64], index: 3, kind: input, shape index: {}]   ;;  %s546_s0 = inlined_call_operand.vmem [shape: bf16[4,128], index: 0, kind: input, shape index: {}]   ;;  %s547_s5 = inlined_call_operand.vmem [shape: bf16[64,128], index: 5, kind: input, shape index: {}]   ;;  %s548_s2 = inlined_call_operand.vmem [shape: f32[1,64], index: 2, kind: input, shape index: {}]   ;;  %s549_s4 = inlined_call_operand.vmem [shape: f32[1,64], index: 4, kind: input, shape index: {}]   ;;  %s550_s6 = inlined_call_operand.vmem [shape: f32[1,128], index: 6, kind: input, shape index: {}]   ;;  %s551_s7 = inlined_call_operand.vmem [shape: f32[4,128], index: 7, kind: output, shape index: {}]  }
   0x1   :  { %353 = vmatprep.subr.bf16.mxu0 %v415_v0  ;;  %v399_v1 = vld [vmem:[%s544_s1 + $0x38] sm:$0xff]   ;;  %369 = vmatprep.mubr.msk.bf16.mxu0 %vm416_vm0, %v415_v0  ;;  %v400_v2 = vld [vmem:[%s544_s1 + $0x30] sm:$0xff]   ;;  %v401_v3 = vld [vmem:[%s544_s1 + $0x28] sm:$0xff]  }
   0x2   :  { %373 = vmatprep.subr.bf16.mxu1 %v415_v0  ;;  %381 = vmatprep.mubr.msk.bf16.mxu1 %vm416_vm0, %v415_v0  ;;  %v407_v4 = vld [vmem:[%s545_s3 + $0x18] sm:$0xff]   ;;  %v402_v5 = vld [vmem:[%s544_s1 + $0x20] sm:$0xff]   ;;  %v408_v6 = vld [vmem:[%s545_s3 + $0x10] sm:$0xff]  }
   0x3   :  { %354 = vmatpush3.bf16.msra.mxu0 %v399_v1  ;;  %374 = vmatpush3.bf16.msra.mxu1 %v407_v4  ;;  %v403_v7 = vld [vmem:[%s544_s1 + $0x18] sm:$0xff]   ;;  %v404_v8 = vld [vmem:[%s544_s1 + $0x10] sm:$0xff]   ;;  %v405_v9 = vld [vmem:[%s544_s1 + $0x8] sm:$0xff]  }
   0x4   :  { %355 = vmatprep.subr.bf16.mxu0 %v415_v0  ;;  %375 = vmatprep.subr.bf16.mxu1 %v415_v0  ;;  %v406_v10 = vld [vmem:[%s544_s1] sm:$0xff]   ;;  %v409_v12 = vld [vmem:[%s545_s3 + $0x8] sm:$0xff]   ;;  %v411_v20 = vld [vmem:[%s547_s5 + $0x18] sm:$0xff]  }
   0x5   :  { %v27_v11 = vld [vmem:[%s546_s0] sm:$0x3]  ;;  %v412_v23 = vld [vmem:[%s547_s5 + $0x10] sm:$0xff]   ;;  %v413_v24 = vld [vmem:[%s547_s5 + $0x8] sm:$0xff]  }
   0x6   :  { %v410_v13 = vld [vmem:[%s545_s3] sm:$0xff]  }
   0x7   :  { %356 = vmatpush3.bf16.msra.mxu0 %v400_v2  ;;  %376 = vmatpush3.bf16.msra.mxu1 %v408_v6  ;;  %v313_v14 = vld [vmem:[%s548_s2] ss:$0 sm:$0xff] }
   0x8   :  { %357 = vmatprep.subr.bf16.mxu0 %v415_v0  ;;  %377 = vmatprep.subr.bf16.mxu1 %v415_v0  ;;  %v414_v25 = vld [vmem:[%s547_s5] sm:$0xff]  }
   0x9   :  { %v322_v26 = vld [vmem:[%s549_s4] ss:$0 sm:$0xff] }
   0xa   :  { %v328_v34 = vld [vmem:[%s550_s6] ss:$0 sm:$0xff] }
   0xb   :  { %358 = vmatpush3.bf16.msra.mxu0 %v401_v3  ;;  %378 = vmatpush3.bf16.msra.mxu1 %v409_v12 }
   0xc   :  { %359 = vmatprep.subr.bf16.mxu0 %v415_v0  ;;  %379 = vmatprep.subr.bf16.mxu1 %v415_v0 }
   0xf   :  { %360 = vmatpush3.bf16.msra.mxu0 %v402_v5  ;;  %380 = vmatpush3.bf16.msra.mxu1 %v410_v13 }
  0x10   :  { %361 = vmatprep.subr.bf16.mxu0 %v415_v0  ;;  %385 = vmatprep.subr.bf16.mxu1 %v415_v0 }
  0x13   :  { %362 = vmatpush3.bf16.msra.mxu0 %v403_v7 }
  0x14   :  { %363 = vmatprep.subr.bf16.mxu0 %v415_v0 }
  0x17   :  { %364 = vmatpush3.bf16.msra.mxu0 %v404_v8 }
  0x18   :  { %365 = vmatprep.subr.bf16.mxu0 %v415_v0 }
  0x1b   :  { %366 = vmatpush3.bf16.msra.mxu0 %v405_v9 }
  0x1c   :  { %367 = vmatprep.subr.bf16.mxu0 %v415_v0 }
  0x1f   :  { %368 = vmatpush3.bf16.msra.mxu0 %v406_v10 }
  0x22   :  { %370 = vmatmul.mubr.bf16.vlgmr.msra.gmra.mxu0 %v27_v11 }
  0xe2   :  { %v133_v15 = vpop.f32.mrf.mxu0 }
  0xe3   :  { %v134_v16 = vadd.f32 %v313_v14, %v133_v15 }
  0xe4   :  { %v371_v17 = vpop.f32.mrf.mxu0 }
  0xe5   :  { %v139_v18 = vmax.f32 %v134_v16, 0.0 }
  0xe6   :  { %v136_v19 = vpop.f32.mrf.mxu0 }
  0xe7   :  { %v140_v21 = vpack.c.bf16 %v139_v18, %v139_v18 }
  0xe8   :  { %v372_v22 = vpop.f32.mrf.mxu0 }
  0xe9   :  { %382 = vmatmul.mubr.msk.bf16.vlgmr.msra.gmra.mxu1 %vm180_vm1, %v140_v21 }
  0xea   :  { %386 = vmatpush3.bf16.msra.mxu1 %v411_v20  ;;  %393 = vmatprep.mubr.msk.bf16.mxu1 %vm416_vm0, %v415_v0 }
  0xeb   :  { %387 = vmatprep.subr.bf16.mxu1 %v415_v0 }
  0xee   :  { %388 = vmatpush3.bf16.msra.mxu1 %v412_v23 }
  0xef   :  { %389 = vmatprep.subr.bf16.mxu1 %v415_v0 }
  0xf2   :  { %390 = vmatpush3.bf16.msra.mxu1 %v413_v24 }
  0xf3   :  { %391 = vmatprep.subr.bf16.mxu1 %v415_v0 }
  0xf6   :  { %392 = vmatpush3.bf16.msra.mxu1 %v414_v25 }
 0x1a9   :  { %v218_v27 = vpop.f32.mrf.mxu1 }
 0x1aa   :  { %v219_v28 = vadd.f32 %v322_v26, %v218_v27 }
 0x1ab   :  { %v383_v29 = vpop.f32.mrf.mxu1 }
 0x1ac   :  { %v224_v30 = vmax.f32 %v219_v28, 0.0 }
 0x1ad   :  { %v221_v31 = vpop.f32.mrf.mxu1 }
 0x1ae   :  { %v225_v32 = vpack.c.bf16 %v224_v30, %v224_v30 }
 0x1af   :  { %v384_v33 = vpop.f32.mrf.mxu1 }
 0x1b0   :  { %394 = vmatmul.mubr.msk.bf16.vlgmr.msra.gmra.mxu1 %vm180_vm1, %v225_v32 }
 0x270   :  { %v302_v35 = vpop.f32.mrf.mxu1 }
 0x271   :  { %v303_v36 = vadd.f32 %v328_v34, %v302_v35 }
 0x272   :  { %v395_v37 = vpop.f32.mrf.mxu1 }
 0x273   :  { %308 = vst [vmem:[%s551_s7] sm:$0xf] %v303_v36 }
 0x274   :  { %v305_v38 = vpop.f32.mrf.mxu1 }
 0x276   :  { %v396_v39 = vpop.f32.mrf.mxu1 }

</bundles_post_ra>
